<compile_context>
chip_gen: v7x
topology: tpu7x:2x2x1
jax: 0.10.0
libtpu: 0.0.40
codegen_flags: <defaults>
</compile_context>

<pallas_src>
import functools
import math

import jax
import jax.numpy as jnp
from jax.experimental import pallas as pl
from jax.experimental.pallas import tpu as pltpu

_LANES = 128
_NEG100 = -100.0
_LOG_PMIN = math.log(1e-7)


def _round_up(x, m):
    return (x + m - 1) // m * m


def _normalize_weights(w, n):
    if isinstance(w, (list, tuple)):
        assert len(w) == n
        return tuple(float(v) for v in w)
    return tuple(float(w) for _ in range(n))


def _canon_dtype(a):
    """Down-cast 64-bit arrays; keep narrow dtypes (bf16/int8) for cheap DMA."""
    if a.dtype.itemsize > 4:
        if jnp.issubdtype(a.dtype, jnp.floating):
            return a.astype(jnp.float32)
        return a.astype(jnp.int32)
    return a


def _tensorcores_per_chip():
    """Best-effort TensorCores-per-chip detection for the 'parallel' split."""
    try:
        dev = jax.devices()[0]
        if dev.platform != "tpu":
            return 1
        kind = str(getattr(dev, "device_kind", "")).lower()
        if any(t in kind for t in ("v7", "7x")):
            return 2                       # v7x: 2 TensorCores per chip
        if "v4" in kind or "v5p" in kind:
            return 2                       # megacore chips
        if "v5" in kind and "lite" not in kind and "v5e" not in kind:
            return 2                       # "TPU v5" (v5p)
    except Exception:
        pass
    return 1                               # v5e / v6e / unknown: single TC


def _plan_tiling(batch, num_tasks, itemsize_x, itemsize_y, num_splits):
    """Pick (tile_sub, nb_pad, num_splits, steps_per_split) for the batch grid."""
    nb = max(-(-batch // _LANES), 1)       # 128-lane batch rows
    min_item = min(itemsize_x, itemsize_y)
    granule = 8 if min_item >= 4 else (16 if min_item == 2 else 32)
    # VMEM bytes per sublane-row of one tile: 2x double-buffered input blocks
    # (native dtype) + the two f32 accumulator scratch blocks.
    row_bytes = _LANES * (2 * num_tasks * (itemsize_x + itemsize_y)
                          + (2 * num_tasks - 1) * 4)
    budget = 32 * 1024 * 1024              # keep well under vmem_limit_bytes
    max_tile = max(granule, min(1024, budget // row_bytes // granule * granule))
    n_chunks = -(-nb // max_tile)
    n_chunks = -(-n_chunks // num_splits) * num_splits
    tile = _round_up(-(-nb // n_chunks), granule)
    nb_pad = n_chunks * tile
    steps_per_split = n_chunks // num_splits
    return tile, nb_pad, num_splits, steps_per_split


def _make_compiler_params():
    kwargs = dict(dimension_semantics=("parallel", "arbitrary"),
                  vmem_limit_bytes=48 * 1024 * 1024)
    try:
        return pltpu.CompilerParams(allow_input_fusion=[True, True], **kwargs)
    except TypeError:  # older jax without allow_input_fusion
        return pltpu.CompilerParams(**kwargs)


def _make_ips_loss_kernel(activation, num_tasks, tile_sub, steps_per_split):
    def kernel(x_ref, y_ref, task_out_ref, ips_out_ref, task_acc, ips_acc):
        g = pl.program_id(1)               # batch step within split (reduction)

        @pl.when(g == 0)
        def _zero():
            task_acc[...] = jnp.zeros_like(task_acc)
            ips_acc[...] = jnp.zeros_like(ips_acc)

        shape = (tile_sub, _LANES)
        p = jnp.ones(shape, jnp.float32)        # clamped cumprod of x_i
        log_p = jnp.zeros(shape, jnp.float32)   # running log(p), no per-task log
        prev_inv = None
        prev_label = None

        for i in range(num_tasks):
            zi = x_ref[i].astype(jnp.float32)   # (tile_sub, 128)
            yi = y_ref[i].astype(jnp.float32)

            if activation:
                e = jnp.exp(-zi)                # inf for z <~ -87 (like torch)
                one_pe = 1.0 + e
                xi = 1.0 / one_pe               # sigmoid(z), f32-saturating
                log1pe = jnp.log(one_pe)        # shared by both IPS logs
                log_x = jnp.maximum(-log1pe, _NEG100)
            else:
                xi = zi
                log_x = jnp.maximum(jnp.log(xi), _NEG100)

            # ---- task branch: BCE(cumprod p, y) with PyTorch's clamps -------
            p = jnp.maximum(p * xi, 1e-7)
            log_p = jnp.maximum(log_p + log_x, _LOG_PMIN)   # == log(p) >= -16.1
            log_1mp = jnp.maximum(jnp.log(1.0 - p), _NEG100)
            task_acc[i] += -(yi * log_p + (1.0 - yi) * log_1mp)

            # ---- IPS branch: BCE(x_i, y_i) * y_{i-1} * clamp(1/x_{i-1}) -----
            if i >= 1:
                if activation:
                    log_1mx = jnp.maximum(-zi - log1pe, _NEG100)
                    # Keep F.binary_cross_entropy's clamp semantics at the f32
                    # sigmoid saturation points:
                    #   sigmoid(z) == 1.0  ->  log(1 - x) = log(0)  -> -100
                    #   sigmoid(z) == 0.0  ->  log(1 - x) = log(1)  ->    0
                    log_1mx = jnp.where(xi >= 1.0, _NEG100, log_1mx)
                    log_1mx = jnp.where(xi <= 0.0, 0.0, log_1mx)
                else:
                    log_1mx = jnp.maximum(jnp.log(1.0 - xi), _NEG100)
                bce_i = -(yi * log_x + (1.0 - yi) * log_1mx)
                ips_acc[i - 1] += bce_i * (prev_label * prev_inv)

            if i < num_tasks - 1:
                if activation:
                    # 1/sigmoid(z) == 1 + e > 0 -> only the +1000 clamp binds.
                    prev_inv = jnp.minimum(one_pe, 1000.0)
                else:
                    prev_inv = jnp.clip(1.0 / xi, -1000.0, 1000.0)
                prev_label = yi

        @pl.when(g == steps_per_split - 1)
        def _finalize():
            # Fold sublanes -> lane-dense (T, 128) partial sums; the wrapper
            # does the final lane reduction, split sum and 1/B scaling.
            task_out_ref[0] = jnp.sum(task_acc[...], axis=1)
            ips_out_ref[0] = jnp.sum(ips_acc[...], axis=1)

    return kernel


@functools.partial(
    jax.jit,
    static_argnames=("ips_w", "task_w", "activation", "plan", "splits_hint"))
def _ips_loss_impl(inputs, targets, ips_w, task_w, activation, plan,
                   splits_hint):
    B, T = inputs.shape
    assert T >= 2

    x = _canon_dtype(inputs)
    y = _canon_dtype(targets)

    if plan is None:
        tile, nb_pad, num_splits, steps_per_split = _plan_tiling(
            B, T, x.dtype.itemsize, y.dtype.itemsize, splits_hint)
    else:
        tile, nb_pad, num_splits, steps_per_split = plan
    assert nb_pad == tile * num_splits * steps_per_split
    b_pad = nb_pad * _LANES
    assert b_pad >= B

    # Layout fold (B, T) -> (T, nb_pad, 128).  Padded rows use neutral values
    # (sigmoid(30) == 1.0 in f32, target 1.0) whose BCE/IPS contribution is
    # exactly zero, so the kernel needs no pad mask.
    # TODO(synk): producers that can emit activations already in (T, B) layout
    # should bypass this fold; allow_input_fusion is set so XLA may fuse it.
    pad_x = 30.0 if activation else 1.0
    if b_pad != B:
        x = jnp.pad(x, ((0, b_pad - B), (0, 0)), constant_values=pad_x)
        y = jnp.pad(y, ((0, b_pad - B), (0, 0)), constant_values=1.0)
    x = x.T.reshape(T, nb_pad, _LANES)
    y = y.T.reshape(T, nb_pad, _LANES)

    kernel = _make_ips_loss_kernel(bool(activation), T, tile, steps_per_split)
    in_map = lambda s, g: (0, s * steps_per_split + g, 0)

    task_part, ips_part = pl.pallas_call(
        kernel,
        grid=(num_splits, steps_per_split),
        in_specs=[
            pl.BlockSpec((T, tile, _LANES), in_map),
            pl.BlockSpec((T, tile, _LANES), in_map),
        ],
        out_specs=(
            pl.BlockSpec((1, T, _LANES), lambda s, g: (s, 0, 0)),
            pl.BlockSpec((1, T - 1, _LANES), lambda s, g: (s, 0, 0)),
        ),
        out_shape=(
            jax.ShapeDtypeStruct((num_splits, T, _LANES), jnp.float32),
            jax.ShapeDtypeStruct((num_splits, T - 1, _LANES), jnp.float32),
        ),
        scratch_shapes=[
            pltpu.VMEM((T, tile, _LANES), jnp.float32),
            pltpu.VMEM((T - 1, tile, _LANES), jnp.float32),
        ],
        compiler_params=_make_compiler_params(),
    )(x, y)

    inv_b = 1.0 / float(B)
    loss_task = (task_part.sum(axis=(0, 2)) * inv_b
                 * jnp.asarray(task_w, jnp.float32))
    loss_ips = (ips_part.sum(axis=(0, 2)) * inv_b
                * jnp.asarray(ips_w, jnp.float32))
    total = jnp.sum(loss_ips) + jnp.sum(loss_task)
    return total, loss_ips, loss_task


def ips_loss(inputs, targets, ips_weights=0.1, task_weights=1.0,
             activation=True, plan=None):
    """Pallas implementation of IPSLoss.forward.

    inputs, targets: (B, T) arrays (f32 / bf16 / f16 / int targets), T >= 2.
    Returns (total_loss, loss_ips[T-1], loss_task[T]).
    """
    x = jnp.asarray(inputs)
    y = jnp.asarray(targets)
    T = x.shape[-1]
    ips_w = _normalize_weights(ips_weights, T - 1)
    task_w = _normalize_weights(task_weights, T)
    return _ips_loss_impl(x, y, ips_w, task_w, bool(activation),
                          None if plan is None else tuple(plan),
                          _tensorcores_per_chip())


def ips_loss_ref(inputs, targets, ips_weights=0.1, task_weights=1.0,
                 activation=True):
    """Pure-JAX reference mirroring the PyTorch module."""
    x = jnp.asarray(inputs, jnp.float32)
    y = jnp.asarray(targets, jnp.float32)
    if activation:
        x = jax.nn.sigmoid(x)
    B, T = x.shape
    ips_w = _normalize_weights(ips_weights, T - 1)
    task_w = _normalize_weights(task_weights, T)

    def bce(p, t):
        lp = jnp.maximum(jnp.log(p), -100.0)
        l1p = jnp.maximum(jnp.log(1.0 - p), -100.0)
        return -(t * lp + (1.0 - t) * l1p)

    p_tmp = jnp.ones((B,), jnp.float32)
    loss_task, loss_ips = [], []
    outs, labels = [], []
    for i in range(T):
        p_tmp = jnp.maximum(p_tmp * x[:, i], 1e-7)
        outs.append(x[:, i])
        labels.append(y[:, i])
        loss_task.append(jnp.mean(bce(p_tmp, y[:, i])))
    for i in range(1, T):
        ips = jnp.clip(1.0 / outs[i - 1], -1000.0, 1000.0)
        l = bce(x[:, i], y[:, i])
        loss_ips.append(jnp.mean(l * labels[i - 1] * ips))
    loss_ips = jnp.stack([loss_ips[i] * ips_w[i] for i in range(T - 1)])
    loss_task = jnp.stack([loss_task[i] * task_w[i] for i in range(T)])
    return jnp.sum(loss_ips) + jnp.sum(loss_task), loss_ips, loss_task


if __name__ == "__main__":
    key = jax.random.PRNGKey(0)

    def _check(B, T, activation, ips_w, task_w, plan, dtype, k):
        k1, k2 = jax.random.split(k)
        if activation:
            x = jax.random.normal(k1, (B, T), dtype=jnp.float32)
        else:
            x = jax.random.uniform(k1, (B, T), minval=0.05, maxval=0.95,
                                   dtype=jnp.float32)
        y = (jax.random.uniform(k2, (B, T)) > 0.5).astype(jnp.float32)
        x = x.astype(dtype)
        y = y.astype(dtype)
        got = ips_loss(x, y, ips_weights=ips_w, task_weights=task_w,
                       activation=activation, plan=plan)
        jax.block_until_ready(got)
        want = ips_loss_ref(x, y, ips_weights=ips_w, task_weights=task_w,
                            activation=activation)
        for g, w in zip(got, want):
            assert jnp.allclose(g, w, rtol=1e-4, atol=1e-5), (g, w)

    k1, k2, k3 = jax.random.split(key, 3)
    # small batch, sigmoid activation, scalar weights (neutral-padded tail)
    _check(16, 3, True, 0.1, 1.0, None, jnp.float32, k1)
    # probabilities already (activation=False), list weights, B % 128 != 0
    _check(300, 4, False, [0.2, 0.1, 0.3], [1.0, 0.5, 0.5, 2.0], None,
           jnp.float32, k2)
    # bf16 inputs/targets + forced 2-way "parallel" split grid path
    _check(2048, 3, True, 0.1, 1.0, (16, 32, 2, 1), jnp.bfloat16, k3)

    print("KERNEL_OK")
</pallas_src>

<mosaic_0001>
module attributes {stable_mosaic.version = 11 : i64} {
  func.func @kernel(%arg0: i32, %arg1: i32, %arg2: memref<3x8x128xf32, #tpu.memory_space<vmem>>, %arg3: memref<3x8x128xf32, #tpu.memory_space<vmem>>, %arg4: memref<1x3x128xf32, #tpu.memory_space<vmem>>, %arg5: memref<1x2x128xf32, #tpu.memory_space<vmem>>, %arg6: memref<3x8x128xf32, #tpu.memory_space<vmem>>, %arg7: memref<2x8x128xf32, #tpu.memory_space<vmem>>) attributes {dimension_semantics = [#tpu.dimension_semantics<parallel>, #tpu.dimension_semantics<arbitrary>], iteration_bounds = array<i64: 1, 1>, scalar_prefetch = 0 : i64, scratch_operands = 2 : i64, tpu.core_type = #tpu.core_type<tc>, window_params = [{transform_indices = @transform_0, window_bounds = array<i64: 3, 8, 128>}, {transform_indices = @transform_1, window_bounds = array<i64: 3, 8, 128>}, {transform_indices = @transform_2, window_bounds = array<i64: 1, 3, 128>}, {transform_indices = @transform_3, window_bounds = array<i64: 1, 2, 128>}]} {
    %c0_i32 = arith.constant 0 : i32
    %0 = arith.cmpi eq, %arg1, %c0_i32 : i32
    %1 = arith.extui %0 : i1 to i32
    %c0_i32_0 = arith.constant 0 : i32
    %2 = arith.cmpi ne, %1, %c0_i32_0 : i32
    scf.if %2 {
      %cst_100 = arith.constant 0.000000e+00 : f32
      %188 = vector.broadcast %cst_100 : f32 to vector<3x8x128xf32>
      %c0_101 = arith.constant 0 : index
      %c0_102 = arith.constant 0 : index
      %c0_103 = arith.constant 0 : index
      %189 = vector.load %arg6[%c0_101, %c0_102, %c0_103] : memref<3x8x128xf32, #tpu.memory_space<vmem>>, vector<3x8x128xf32>
      tpu.vector_store %arg6[%c0_101, %c0_102, %c0_103], %188 {strides = array<i32>} : memref<3x8x128xf32, #tpu.memory_space<vmem>>, vector<3x8x128xf32>,
      %cst_104 = arith.constant 0.000000e+00 : f32
      %190 = vector.broadcast %cst_104 : f32 to vector<2x8x128xf32>
      %c0_105 = arith.constant 0 : index
      %c0_106 = arith.constant 0 : index
      %c0_107 = arith.constant 0 : index
      %191 = vector.load %arg7[%c0_105, %c0_106, %c0_107] : memref<2x8x128xf32, #tpu.memory_space<vmem>>, vector<2x8x128xf32>
      tpu.vector_store %arg7[%c0_105, %c0_106, %c0_107], %190 {strides = array<i32>} : memref<2x8x128xf32, #tpu.memory_space<vmem>>, vector<2x8x128xf32>,
    } else {
    }
    %cst = arith.constant 1.000000e+00 : f32
    %3 = vector.broadcast %cst : f32 to vector<8x128xf32>
    %cst_1 = arith.constant 0.000000e+00 : f32
    %4 = vector.broadcast %cst_1 : f32 to vector<8x128xf32>
    %c0 = arith.constant 0 : index
    %c0_2 = arith.constant 0 : index
    %c0_3 = arith.constant 0 : index
    %5 = vector.load %arg2[%c0, %c0_2, %c0_3] : memref<3x8x128xf32, #tpu.memory_space<vmem>>, vector<1x8x128xf32>
    %6 = vector.shape_cast %5 : vector<1x8x128xf32> to vector<8x128xf32>
    %c0_4 = arith.constant 0 : index
    %c0_5 = arith.constant 0 : index
    %c0_6 = arith.constant 0 : index
    %7 = vector.load %arg3[%c0_4, %c0_5, %c0_6] : memref<3x8x128xf32, #tpu.memory_space<vmem>>, vector<1x8x128xf32>
    %8 = vector.shape_cast %7 : vector<1x8x128xf32> to vector<8x128xf32>
    %cst_7 = arith.constant 0.000000e+00 : f32
    %9 = vector.broadcast %cst_7 : f32 to vector<8x128xf32>
    %10 = arith.subf %9, %6 : vector<8x128xf32>
    %11 = math.exp %10 : vector<8x128xf32>
    %cst_8 = arith.constant 1.000000e+00 : f32
    %12 = vector.broadcast %cst_8 : f32 to vector<8x128xf32>
    %13 = arith.addf %12, %11 : vector<8x128xf32>
    %cst_9 = arith.constant 1.000000e+00 : f32
    %14 = vector.broadcast %cst_9 : f32 to vector<8x128xf32>
    %15 = arith.divf %14, %13 : vector<8x128xf32>
    %16 = math.log %13 : vector<8x128xf32>
    %cst_10 = arith.constant 0.000000e+00 : f32
    %17 = vector.broadcast %cst_10 : f32 to vector<8x128xf32>
    %18 = arith.subf %17, %16 : vector<8x128xf32>
    %cst_11 = arith.constant -1.000000e+02 : f32
    %19 = vector.broadcast %cst_11 : f32 to vector<8x128xf32>
    %20 = arith.maximumf %18, %19 : vector<8x128xf32>
    %21 = arith.mulf %3, %15 : vector<8x128xf32>
    %cst_12 = arith.constant 1.000000e-07 : f32
    %22 = vector.broadcast %cst_12 : f32 to vector<8x128xf32>
    %23 = arith.maximumf %21, %22 : vector<8x128xf32>
    %24 = arith.addf %4, %20 : vector<8x128xf32>
    %cst_13 = arith.constant -16.1180954 : f32
    %25 = vector.broadcast %cst_13 : f32 to vector<8x128xf32>
    %26 = arith.maximumf %24, %25 : vector<8x128xf32>
    %cst_14 = arith.constant 1.000000e+00 : f32
    %27 = vector.broadcast %cst_14 : f32 to vector<8x128xf32>
    %28 = arith.subf %27, %23 : vector<8x128xf32>
    %29 = math.log %28 : vector<8x128xf32>
    %cst_15 = arith.constant -1.000000e+02 : f32
    %30 = vector.broadcast %cst_15 : f32 to vector<8x128xf32>
    %31 = arith.maximumf %29, %30 : vector<8x128xf32>
    %c0_16 = arith.constant 0 : index
    %c0_17 = arith.constant 0 : index
    %c0_18 = arith.constant 0 : index
    %32 = vector.load %arg6[%c0_16, %c0_17, %c0_18] : memref<3x8x128xf32, #tpu.memory_space<vmem>>, vector<1x8x128xf32>
    %33 = vector.shape_cast %32 : vector<1x8x128xf32> to vector<8x128xf32>
    %34 = arith.mulf %8, %26 : vector<8x128xf32>
    %cst_19 = arith.constant 1.000000e+00 : f32
    %35 = vector.broadcast %cst_19 : f32 to vector<8x128xf32>
    %36 = arith.subf %35, %8 : vector<8x128xf32>
    %37 = arith.mulf %36, %31 : vector<8x128xf32>
    %38 = arith.addf %34, %37 : vector<8x128xf32>
    %cst_20 = arith.constant 0.000000e+00 : f32
    %39 = vector.broadcast %cst_20 : f32 to vector<8x128xf32>
    %40 = arith.subf %39, %38 : vector<8x128xf32>
    %41 = arith.addf %33, %40 : vector<8x128xf32>
    %c0_21 = arith.constant 0 : index
    %c0_22 = arith.constant 0 : index
    %c0_23 = arith.constant 0 : index
    %42 = vector.load %arg6[%c0_21, %c0_22, %c0_23] : memref<3x8x128xf32, #tpu.memory_space<vmem>>, vector<1x8x128xf32>
    %43 = vector.shape_cast %42 : vector<1x8x128xf32> to vector<8x128xf32>
    %44 = vector.shape_cast %41 : vector<8x128xf32> to vector<1x8x128xf32>
    tpu.vector_store %arg6[%c0_21, %c0_22, %c0_23], %44 {strides = array<i32>} : memref<3x8x128xf32, #tpu.memory_space<vmem>>, vector<1x8x128xf32>,
    %cst_24 = arith.constant 1.000000e+03 : f32
    %45 = vector.broadcast %cst_24 : f32 to vector<8x128xf32>
    %46 = arith.minimumf %13, %45 : vector<8x128xf32>
    %c1 = arith.constant 1 : index
    %c0_25 = arith.constant 0 : index
    %c0_26 = arith.constant 0 : index
    %47 = vector.load %arg2[%c1, %c0_25, %c0_26] : memref<3x8x128xf32, #tpu.memory_space<vmem>>, vector<1x8x128xf32>
    %48 = vector.shape_cast %47 : vector<1x8x128xf32> to vector<8x128xf32>
    %c1_27 = arith.constant 1 : index
    %c0_28 = arith.constant 0 : index
    %c0_29 = arith.constant 0 : index
    %49 = vector.load %arg3[%c1_27, %c0_28, %c0_29] : memref<3x8x128xf32, #tpu.memory_space<vmem>>, vector<1x8x128xf32>
    %50 = vector.shape_cast %49 : vector<1x8x128xf32> to vector<8x128xf32>
    %cst_30 = arith.constant 0.000000e+00 : f32
    %51 = vector.broadcast %cst_30 : f32 to vector<8x128xf32>
    %52 = arith.subf %51, %48 : vector<8x128xf32>
    %53 = math.exp %52 : vector<8x128xf32>
    %cst_31 = arith.constant 1.000000e+00 : f32
    %54 = vector.broadcast %cst_31 : f32 to vector<8x128xf32>
    %55 = arith.addf %54, %53 : vector<8x128xf32>
    %cst_32 = arith.constant 1.000000e+00 : f32
    %56 = vector.broadcast %cst_32 : f32 to vector<8x128xf32>
    %57 = arith.divf %56, %55 : vector<8x128xf32>
    %58 = math.log %55 : vector<8x128xf32>
    %cst_33 = arith.constant 0.000000e+00 : f32
    %59 = vector.broadcast %cst_33 : f32 to vector<8x128xf32>
    %60 = arith.subf %59, %58 : vector<8x128xf32>
    %cst_34 = arith.constant -1.000000e+02 : f32
    %61 = vector.broadcast %cst_34 : f32 to vector<8x128xf32>
    %62 = arith.maximumf %60, %61 : vector<8x128xf32>
    %63 = arith.mulf %23, %57 : vector<8x128xf32>
    %cst_35 = arith.constant 1.000000e-07 : f32
    %64 = vector.broadcast %cst_35 : f32 to vector<8x128xf32>
    %65 = arith.maximumf %63, %64 : vector<8x128xf32>
    %66 = arith.addf %26, %62 : vector<8x128xf32>
    %cst_36 = arith.constant -16.1180954 : f32
    %67 = vector.broadcast %cst_36 : f32 to vector<8x128xf32>
    %68 = arith.maximumf %66, %67 : vector<8x128xf32>
    %cst_37 = arith.constant 1.000000e+00 : f32
    %69 = vector.broadcast %cst_37 : f32 to vector<8x128xf32>
    %70 = arith.subf %69, %65 : vector<8x128xf32>
    %71 = math.log %70 : vector<8x128xf32>
    %cst_38 = arith.constant -1.000000e+02 : f32
    %72 = vector.broadcast %cst_38 : f32 to vector<8x128xf32>
    %73 = arith.maximumf %71, %72 : vector<8x128xf32>
    %c1_39 = arith.constant 1 : index
    %c0_40 = arith.constant 0 : index
    %c0_41 = arith.constant 0 : index
    %74 = vector.load %arg6[%c1_39, %c0_40, %c0_41] : memref<3x8x128xf32, #tpu.memory_space<vmem>>, vector<1x8x128xf32>
    %75 = vector.shape_cast %74 : vector<1x8x128xf32> to vector<8x128xf32>
    %76 = arith.mulf %50, %68 : vector<8x128xf32>
    %cst_42 = arith.constant 1.000000e+00 : f32
    %77 = vector.broadcast %cst_42 : f32 to vector<8x128xf32>
    %78 = arith.subf %77, %50 : vector<8x128xf32>
    %79 = arith.mulf %78, %73 : vector<8x128xf32>
    %80 = arith.addf %76, %79 : vector<8x128xf32>
    %cst_43 = arith.constant 0.000000e+00 : f32
    %81 = vector.broadcast %cst_43 : f32 to vector<8x128xf32>
    %82 = arith.subf %81, %80 : vector<8x128xf32>
    %83 = arith.addf %75, %82 : vector<8x128xf32>
    %c1_44 = arith.constant 1 : index
    %c0_45 = arith.constant 0 : index
    %c0_46 = arith.constant 0 : index
    %84 = vector.load %arg6[%c1_44, %c0_45, %c0_46] : memref<3x8x128xf32, #tpu.memory_space<vmem>>, vector<1x8x128xf32>
    %85 = vector.shape_cast %84 : vector<1x8x128xf32> to vector<8x128xf32>
    %86 = vector.shape_cast %83 : vector<8x128xf32> to vector<1x8x128xf32>
    tpu.vector_store %arg6[%c1_44, %c0_45, %c0_46], %86 {strides = array<i32>} : memref<3x8x128xf32, #tpu.memory_space<vmem>>, vector<1x8x128xf32>,
    %cst_47 = arith.constant 0.000000e+00 : f32
    %87 = vector.broadcast %cst_47 : f32 to vector<8x128xf32>
    %88 = arith.subf %87, %48 : vector<8x128xf32>
    %89 = arith.subf %88, %58 : vector<8x128xf32>
    %cst_48 = arith.constant -1.000000e+02 : f32
    %90 = vector.broadcast %cst_48 : f32 to vector<8x128xf32>
    %91 = arith.maximumf %89, %90 : vector<8x128xf32>
    %cst_49 = arith.constant 1.000000e+00 : f32
    %92 = vector.broadcast %cst_49 : f32 to vector<8x128xf32>
    %93 = arith.cmpf oge, %57, %92 : vector<8x128xf32>
    %cst_50 = arith.constant -1.000000e+02 : f32
    %94 = vector.broadcast %cst_50 : f32 to vector<8x128xf32>
    %95 = arith.select %93, %94, %91 : vector<8x128xi1>, vector<8x128xf32>
    %cst_51 = arith.constant 0.000000e+00 : f32
    %96 = vector.broadcast %cst_51 : f32 to vector<8x128xf32>
    %97 = arith.cmpf ole, %57, %96 : vector<8x128xf32>
    %cst_52 = arith.constant 0.000000e+00 : f32
    %98 = vector.broadcast %cst_52 : f32 to vector<8x128xf32>
    %99 = arith.select %97, %98, %95 : vector<8x128xi1>, vector<8x128xf32>
    %100 = arith.mulf %50, %62 : vector<8x128xf32>
    %cst_53 = arith.constant 1.000000e+00 : f32
    %101 = vector.broadcast %cst_53 : f32 to vector<8x128xf32>
    %102 = arith.subf %101, %50 : vector<8x128xf32>
    %103 = arith.mulf %102, %99 : vector<8x128xf32>
    %104 = arith.addf %100, %103 : vector<8x128xf32>
    %cst_54 = arith.constant 0.000000e+00 : f32
    %105 = vector.broadcast %cst_54 : f32 to vector<8x128xf32>
    %106 = arith.subf %105, %104 : vector<8x128xf32>
    %c0_55 = arith.constant 0 : index
    %c0_56 = arith.constant 0 : index
    %c0_57 = arith.constant 0 : index
    %107 = vector.load %arg7[%c0_55, %c0_56, %c0_57] : memref<2x8x128xf32, #tpu.memory_space<vmem>>, vector<1x8x128xf32>
    %108 = vector.shape_cast %107 : vector<1x8x128xf32> to vector<8x128xf32>
    %109 = arith.mulf %8, %46 : vector<8x128xf32>
    %110 = arith.mulf %106, %109 : vector<8x128xf32>
    %111 = arith.addf %108, %110 : vector<8x128xf32>
    %c0_58 = arith.constant 0 : index
    %c0_59 = arith.constant 0 : index
    %c0_60 = arith.constant 0 : index
    %112 = vector.load %arg7[%c0_58, %c0_59, %c0_60] : memref<2x8x128xf32, #tpu.memory_space<vmem>>, vector<1x8x128xf32>
    %113 = vector.shape_cast %112 : vector<1x8x128xf32> to vector<8x128xf32>
    %114 = vector.shape_cast %111 : vector<8x128xf32> to vector<1x8x128xf32>
    tpu.vector_store %arg7[%c0_58, %c0_59, %c0_60], %114 {strides = array<i32>} : memref<2x8x128xf32, #tpu.memory_space<vmem>>, vector<1x8x128xf32>,
    %cst_61 = arith.constant 1.000000e+03 : f32
    %115 = vector.broadcast %cst_61 : f32 to vector<8x128xf32>
    %116 = arith.minimumf %55, %115 : vector<8x128xf32>
    %c2 = arith.constant 2 : index
    %c0_62 = arith.constant 0 : index
    %c0_63 = arith.constant 0 : index
    %117 = vector.load %arg2[%c2, %c0_62, %c0_63] : memref<3x8x128xf32, #tpu.memory_space<vmem>>, vector<1x8x128xf32>
    %118 = vector.shape_cast %117 : vector<1x8x128xf32> to vector<8x128xf32>
    %c2_64 = arith.constant 2 : index
    %c0_65 = arith.constant 0 : index
    %c0_66 = arith.constant 0 : index
    %119 = vector.load %arg3[%c2_64, %c0_65, %c0_66] : memref<3x8x128xf32, #tpu.memory_space<vmem>>, vector<1x8x128xf32>
    %120 = vector.shape_cast %119 : vector<1x8x128xf32> to vector<8x128xf32>
    %cst_67 = arith.constant 0.000000e+00 : f32
    %121 = vector.broadcast %cst_67 : f32 to vector<8x128xf32>
    %122 = arith.subf %121, %118 : vector<8x128xf32>
    %123 = math.exp %122 : vector<8x128xf32>
    %cst_68 = arith.constant 1.000000e+00 : f32
    %124 = vector.broadcast %cst_68 : f32 to vector<8x128xf32>
    %125 = arith.addf %124, %123 : vector<8x128xf32>
    %cst_69 = arith.constant 1.000000e+00 : f32
    %126 = vector.broadcast %cst_69 : f32 to vector<8x128xf32>
    %127 = arith.divf %126, %125 : vector<8x128xf32>
    %128 = math.log %125 : vector<8x128xf32>
    %cst_70 = arith.constant 0.000000e+00 : f32
    %129 = vector.broadcast %cst_70 : f32 to vector<8x128xf32>
    %130 = arith.subf %129, %128 : vector<8x128xf32>
    %cst_71 = arith.constant -1.000000e+02 : f32
    %131 = vector.broadcast %cst_71 : f32 to vector<8x128xf32>
    %132 = arith.maximumf %130, %131 : vector<8x128xf32>
    %133 = arith.mulf %65, %127 : vector<8x128xf32>
    %cst_72 = arith.constant 1.000000e-07 : f32
    %134 = vector.broadcast %cst_72 : f32 to vector<8x128xf32>
    %135 = arith.maximumf %133, %134 : vector<8x128xf32>
    %136 = arith.addf %68, %132 : vector<8x128xf32>
    %cst_73 = arith.constant -16.1180954 : f32
    %137 = vector.broadcast %cst_73 : f32 to vector<8x128xf32>
    %138 = arith.maximumf %136, %137 : vector<8x128xf32>
    %cst_74 = arith.constant 1.000000e+00 : f32
    %139 = vector.broadcast %cst_74 : f32 to vector<8x128xf32>
    %140 = arith.subf %139, %135 : vector<8x128xf32>
    %141 = math.log %140 : vector<8x128xf32>
    %cst_75 = arith.constant -1.000000e+02 : f32
    %142 = vector.broadcast %cst_75 : f32 to vector<8x128xf32>
    %143 = arith.maximumf %141, %142 : vector<8x128xf32>
    %c2_76 = arith.constant 2 : index
    %c0_77 = arith.constant 0 : index
    %c0_78 = arith.constant 0 : index
    %144 = vector.load %arg6[%c2_76, %c0_77, %c0_78] : memref<3x8x128xf32, #tpu.memory_space<vmem>>, vector<1x8x128xf32>
    %145 = vector.shape_cast %144 : vector<1x8x128xf32> to vector<8x128xf32>
    %146 = arith.mulf %120, %138 : vector<8x128xf32>
    %cst_79 = arith.constant 1.000000e+00 : f32
    %147 = vector.broadcast %cst_79 : f32 to vector<8x128xf32>
    %148 = arith.subf %147, %120 : vector<8x128xf32>
    %149 = arith.mulf %148, %143 : vector<8x128xf32>
    %150 = arith.addf %146, %149 : vector<8x128xf32>
    %cst_80 = arith.constant 0.000000e+00 : f32
    %151 = vector.broadcast %cst_80 : f32 to vector<8x128xf32>
    %152 = arith.subf %151, %150 : vector<8x128xf32>
    %153 = arith.addf %145, %152 : vector<8x128xf32>
    %c2_81 = arith.constant 2 : index
    %c0_82 = arith.constant 0 : index
    %c0_83 = arith.constant 0 : index
    %154 = vector.load %arg6[%c2_81, %c0_82, %c0_83] : memref<3x8x128xf32, #tpu.memory_space<vmem>>, vector<1x8x128xf32>
    %155 = vector.shape_cast %154 : vector<1x8x128xf32> to vector<8x128xf32>
    %156 = vector.shape_cast %153 : vector<8x128xf32> to vector<1x8x128xf32>
    tpu.vector_store %arg6[%c2_81, %c0_82, %c0_83], %156 {strides = array<i32>} : memref<3x8x128xf32, #tpu.memory_space<vmem>>, vector<1x8x128xf32>,
    %cst_84 = arith.constant 0.000000e+00 : f32
    %157 = vector.broadcast %cst_84 : f32 to vector<8x128xf32>
    %158 = arith.subf %157, %118 : vector<8x128xf32>
    %159 = arith.subf %158, %128 : vector<8x128xf32>
    %cst_85 = arith.constant -1.000000e+02 : f32
    %160 = vector.broadcast %cst_85 : f32 to vector<8x128xf32>
    %161 = arith.maximumf %159, %160 : vector<8x128xf32>
    %cst_86 = arith.constant 1.000000e+00 : f32
    %162 = vector.broadcast %cst_86 : f32 to vector<8x128xf32>
    %163 = arith.cmpf oge, %127, %162 : vector<8x128xf32>
    %cst_87 = arith.constant -1.000000e+02 : f32
    %164 = vector.broadcast %cst_87 : f32 to vector<8x128xf32>
    %165 = arith.select %163, %164, %161 : vector<8x128xi1>, vector<8x128xf32>
    %cst_88 = arith.constant 0.000000e+00 : f32
    %166 = vector.broadcast %cst_88 : f32 to vector<8x128xf32>
    %167 = arith.cmpf ole, %127, %166 : vector<8x128xf32>
    %cst_89 = arith.constant 0.000000e+00 : f32
    %168 = vector.broadcast %cst_89 : f32 to vector<8x128xf32>
    %169 = arith.select %167, %168, %165 : vector<8x128xi1>, vector<8x128xf32>
    %170 = arith.mulf %120, %132 : vector<8x128xf32>
    %cst_90 = arith.constant 1.000000e+00 : f32
    %171 = vector.broadcast %cst_90 : f32 to vector<8x128xf32>
    %172 = arith.subf %171, %120 : vector<8x128xf32>
    %173 = arith.mulf %172, %169 : vector<8x128xf32>
    %174 = arith.addf %170, %173 : vector<8x128xf32>
    %cst_91 = arith.constant 0.000000e+00 : f32
    %175 = vector.broadcast %cst_91 : f32 to vector<8x128xf32>
    %176 = arith.subf %175, %174 : vector<8x128xf32>
    %c1_92 = arith.constant 1 : index
    %c0_93 = arith.constant 0 : index
    %c0_94 = arith.constant 0 : index
    %177 = vector.load %arg7[%c1_92, %c0_93, %c0_94] : memref<2x8x128xf32, #tpu.memory_space<vmem>>, vector<1x8x128xf32>
    %178 = vector.shape_cast %177 : vector<1x8x128xf32> to vector<8x128xf32>
    %179 = arith.mulf %50, %116 : vector<8x128xf32>
    %180 = arith.mulf %176, %179 : vector<8x128xf32>
    %181 = arith.addf %178, %180 : vector<8x128xf32>
    %c1_95 = arith.constant 1 : index
    %c0_96 = arith.constant 0 : index
    %c0_97 = arith.constant 0 : index
    %182 = vector.load %arg7[%c1_95, %c0_96, %c0_97] : memref<2x8x128xf32, #tpu.memory_space<vmem>>, vector<1x8x128xf32>
    %183 = vector.shape_cast %182 : vector<1x8x128xf32> to vector<8x128xf32>
    %184 = vector.shape_cast %181 : vector<8x128xf32> to vector<1x8x128xf32>
    tpu.vector_store %arg7[%c1_95, %c0_96, %c0_97], %184 {strides = array<i32>} : memref<2x8x128xf32, #tpu.memory_space<vmem>>, vector<1x8x128xf32>,
    %c0_i32_98 = arith.constant 0 : i32
    %185 = arith.cmpi eq, %arg1, %c0_i32_98 : i32
    %186 = arith.extui %185 : i1 to i32
    %c0_i32_99 = arith.constant 0 : i32
    %187 = arith.cmpi ne, %186, %c0_i32_99 : i32
    scf.if %187 {
      %c0_100 = arith.constant 0 : index
      %c0_101 = arith.constant 0 : index
      %c0_102 = arith.constant 0 : index
      %188 = vector.load %arg6[%c0_100, %c0_101, %c0_102] : memref<3x8x128xf32, #tpu.memory_space<vmem>>, vector<3x8x128xf32>
      %cst_103 = arith.constant dense<0.000000e+00> : vector<3x128xf32>
      %189 = vector.multi_reduction <add>, %188, %cst_103 [1] : vector<3x8x128xf32> to vector<3x128xf32>
      %c0_104 = arith.constant 0 : index
      %c0_105 = arith.constant 0 : index
      %c0_106 = arith.constant 0 : index
      %190 = vector.load %arg4[%c0_104, %c0_105, %c0_106] : memref<1x3x128xf32, #tpu.memory_space<vmem>>, vector<1x3x128xf32>
      %191 = vector.shape_cast %190 : vector<1x3x128xf32> to vector<3x128xf32>
      %192 = vector.shape_cast %189 : vector<3x128xf32> to vector<1x3x128xf32>
      tpu.vector_store %arg4[%c0_104, %c0_105, %c0_106], %192 {strides = array<i32>} : memref<1x3x128xf32, #tpu.memory_space<vmem>>, vector<1x3x128xf32>,
      %c0_107 = arith.constant 0 : index
      %c0_108 = arith.constant 0 : index
      %c0_109 = arith.constant 0 : index
      %193 = vector.load %arg7[%c0_107, %c0_108, %c0_109] : memref<2x8x128xf32, #tpu.memory_space<vmem>>, vector<2x8x128xf32>
      %cst_110 = arith.constant dense<0.000000e+00> : vector<2x128xf32>
      %194 = vector.multi_reduction <add>, %193, %cst_110 [1] : vector<2x8x128xf32> to vector<2x128xf32>
      %c0_111 = arith.constant 0 : index
      %c0_112 = arith.constant 0 : index
      %c0_113 = arith.constant 0 : index
      %195 = vector.load %arg5[%c0_111, %c0_112, %c0_113] : memref<1x2x128xf32, #tpu.memory_space<vmem>>, vector<1x2x128xf32>
      %196 = vector.shape_cast %195 : vector<1x2x128xf32> to vector<2x128xf32>
      %197 = vector.shape_cast %194 : vector<2x128xf32> to vector<1x2x128xf32>
      tpu.vector_store %arg5[%c0_111, %c0_112, %c0_113], %197 {strides = array<i32>} : memref<1x2x128xf32, #tpu.memory_space<vmem>>, vector<1x2x128xf32>,
    } else {
    }
    return
  }
  func.func @transform_0(%arg0: i32, %arg1: i32) -> (i32, i32, i32) {
    %c1_i32 = arith.constant 1 : i32
    %0 = arith.muli %arg0, %c1_i32 : i32
    %1 = arith.addi %0, %arg1 : i32
    %c0_i32 = arith.constant 0 : i32
    %c0_i32_0 = arith.constant 0 : i32
    %c0_i32_1 = arith.constant 0 : i32
    return %c0_i32, %1, %c0_i32_0 : i32, i32, i32
  }
  func.func @transform_1(%arg0: i32, %arg1: i32) -> (i32, i32, i32) {
    %c1_i32 = arith.constant 1 : i32
    %0 = arith.muli %arg0, %c1_i32 : i32
    %1 = arith.addi %0, %arg1 : i32
    %c0_i32 = arith.constant 0 : i32
    %c0_i32_0 = arith.constant 0 : i32
    %c0_i32_1 = arith.constant 0 : i32
    return %c0_i32, %1, %c0_i32_0 : i32, i32, i32
  }
  func.func @transform_2(%arg0: i32, %arg1: i32) -> (i32, i32, i32) {
    %c0_i32 = arith.constant 0 : i32
    %c0_i32_0 = arith.constant 0 : i32
    %c0_i32_1 = arith.constant 0 : i32
    return %arg0, %c0_i32, %c0_i32_0 : i32, i32, i32
  }
  func.func @transform_3(%arg0: i32, %arg1: i32) -> (i32, i32, i32) {
    %c0_i32 = arith.constant 0 : i32
    %c0_i32_0 = arith.constant 0 : i32
    %c0_i32_1 = arith.constant 0 : i32
    return %arg0, %c0_i32, %c0_i32_0 : i32, i32, i32
  }
}

</mosaic_0001>

<bundles_post_ra>
// kernel: _ips_loss_impl.2
= control target key start
LH: loop header
LB: loop body
LE: loop exit
PB: predicated region body
PF: predicated region fallthrough
CT: control target
= control target key end

     0   :  { %vm231_vm4 = vcmask 1041409   ;;  %vm233_vm5 = vcmask 1042434   ;;  %s372_s0 = inlined_call_operand.vmem [shape: f32[1,3,8,128], index: 0, kind: input, shape index: {}]   ;;  %s373_s1 = inlined_call_operand.vmem [shape: f32[1,3,8,128], index: 1, kind: input, shape index: {}]   ;;  %s374_s2 = inlined_call_operand.vmem [shape: f32[1,3,128], index: 2, kind: output, shape index: {0}]   ;;  %s375_s3 = inlined_call_operand.vmem [shape: f32[1,2,128], index: 3, kind: output, shape index: {1}]  }
   0x1   :  { %v47_v0 = vld [vmem:[%s373_s1] sm:$0xff]  ;;  %v276_v1 = vld [vmem:[%s373_s1 + $0x8] sm:$0xff]  ;;  %v277_v2 = vld [vmem:[%s373_s1 + $0x10] sm:$0xff] }
   0x2   :  { %v84_v3 = vsub.f32 0.0, %v47_v0  ;;  %v114_v4 = vsub.f32 0.0, %v276_v1  ;;  %v161_v5 = vsub.f32 0.0, %v277_v2  ;;  %v340_v17 = vld [vmem:[%s372_s0 + $0x8] sm:$0xff]  ;;  %v345_v20 = vld [vmem:[%s372_s0 + $0x10] sm:$0xff]  ;;  %v60_v54 = vld [vmem:[%s372_s0] sm:$0xff] }
   0x3   :  { %v135_v28 = vsub.f32 1.0, %v340_v17  ;;  %v182_v32 = vsub.f32 1.0, %v345_v20  ;;  %v103_v0 = vsub.f32 1.0, %v60_v54 }
   0x4   :  { %v85_v6 = vmul.f32 1.442695, %v84_v3  ;;  %v115_v7 = vmul.f32 1.442695, %v114_v4  ;;  %v162_v8 = vmul.f32 1.442695, %v161_v5 }
   0x6   :  { %280 = vpow2.f32 %v85_v6 }
   0x7   :  { %282 = vpow2.f32 %v115_v7 }
   0x8   :  { %284 = vpow2.f32 %v162_v8 }
  0x10   :  { %v281_v9 = vpop.eup %280 }
  0x11   :  { %v283_v10 = vpop.eup %282  ;;  %v87_v11 = vadd.f32 1.0, %v281_v9 }
  0x12   :  { %v285_v12 = vpop.eup %284  ;;  %v333_v13 = vadd.f32 1.0, %v283_v10 }
  0x13   :  { %286 = vrcp.f32 %v87_v11  ;;  %v164_v14 = vadd.f32 1.0, %v285_v12  ;;  %v109_v30 = vmin.f32 %v87_v11, 1000.0 }
  0x14   :  { %288 = vlog2.f32 %v87_v11  ;;  %v156_v53 = vmin.f32 %v333_v13, 1000.0 }
  0x15   :  { %290 = vrcp.f32 %v333_v13  ;;  %v152_v59 = vmul.f32 %v109_v30, %v60_v54 }
  0x16   :  { %292 = vlog2.f32 %v333_v13 }
  0x17   :  { %294 = vrcp.f32 %v164_v14 }
  0x18   :  { %296 = vlog2.f32 %v164_v14 }
  0x1d   :  { %v287_v15 = vpop.eup %286 }
  0x1e   :  { %v289_v16 = vpop.eup %288  ;;  %v94_v18 = vmax.f32 %v287_v15, 1e-07 }
  0x1f   :  { %v291_v19 = vpop.eup %290  ;;  %v91_v21 = vmul.f32 0.6931472, %v289_v16 }
  0x20   :  { %v293_v22 = vpop.eup %292  ;;  %v97_v23 = vsub.f32 1.0, %v94_v18  ;;  %v124_v24 = vmul.f32 %v291_v19, %v94_v18  ;;  %vm143_vm0 = vcmp.ge.f32.partialorder %v291_v19, 1.0  ;;  %vm145_vm1 = vcmp.le.f32.partialorder %v291_v19, 0.0 }
  0x21   :  { %v295_v25 = vpop.eup %294  ;;  %v92_v26 = vsub.f32 0.0, %v91_v21  ;;  %v121_v27 = vmul.f32 0.6931472, %v293_v22 }
  0x22   :  { %v297_v29 = vpop.eup %296  ;;  %298 = vlog2.f32 %v97_v23  ;;  %v125_v31 = vmax.f32 %v124_v24, 1e-07  ;;  %vm190_vm2 = vcmp.ge.f32.partialorder %v295_v25, 1.0  ;;  %vm192_vm3 = vcmp.le.f32.partialorder %v295_v25, 0.0 }
  0x23   :  { %v93_v33 = vmax.f32 %v92_v26, -100.0  ;;  %v122_v34 = vsub.f32 0.0, %v121_v27  ;;  %v141_v35 = vsub.f32 %v114_v4, %v121_v27  ;;  %v168_v36 = vmul.f32 0.6931472, %v297_v29 }
  0x24   :  { %v128_v37 = vsub.f32 1.0, %v125_v31  ;;  %v171_v38 = vmul.f32 %v295_v25, %v125_v31  ;;  %v200_v4 = vmul.f32 %v340_v17, %v156_v53 }
  0x25   :  { %v96_v39 = vmax.f32 %v93_v33, -16.118095  ;;  %v123_v40 = vmax.f32 %v122_v34, -100.0  ;;  %v142_v41 = vmax.f32 %v141_v35, -100.0  ;;  %v169_v42 = vsub.f32 0.0, %v168_v36 }
  0x26   :  { %300 = vlog2.f32 %v128_v37  ;;  %v172_v43 = vmax.f32 %v171_v38, 1e-07  ;;  %v188_v44 = vsub.f32 %v161_v5, %v168_v36 }
  0x27   :  { %v126_v45 = vadd.f32 %v123_v40, %v96_v39  ;;  %v144_v46 = vsel %vm143_vm0, -100.0, %v142_v41  ;;  %v147_v47 = vmul.f32 %v340_v17, %v123_v40  ;;  %v170_v49 = vmax.f32 %v169_v42, -100.0 }
  0x28   :  { %v146_v48 = vsel %vm145_vm1, 0.0, %v144_v46  ;;  %v175_v50 = vsub.f32 1.0, %v172_v43  ;;  %v189_v51 = vmax.f32 %v188_v44, -100.0  ;;  %v102_v6 = vmul.f32 %v96_v39, %v60_v54 }
  0x29   :  { %v148_v52 = vmul.f32 %v146_v48, %v135_v28  ;;  %v127_v55 = vmax.f32 %v126_v45, -16.118095  ;;  %v194_v57 = vmul.f32 %v345_v20, %v170_v49 }
  0x2a   :  { %302 = vlog2.f32 %v175_v50  ;;  %v191_v56 = vsel %vm190_vm2, -100.0, %v189_v51 }
  0x2b   :  { %v149_v58 = vadd.f32 %v148_v52, %v147_v47  ;;  %v193_v60 = vsel %vm192_vm3, 0.0, %v191_v56  ;;  %v173_v2 = vadd.f32 %v170_v49, %v127_v55  ;;  %v134_v18 = vmul.f32 %v340_v17, %v127_v55 }
  0x2c   :  { %v299_v61 = vpop.eup %298  ;;  %v195_v62 = vmul.f32 %v193_v60, %v182_v32 }
  0x2d   :  { %v99_v63 = vmul.f32 0.6931472, %v299_v61  ;;  %v150_v1 = vsub.f32 0.0, %v149_v58  ;;  %v174_v13 = vmax.f32 %v173_v2, -16.118095 }
  0x2e   :  { %v196_v3 = vadd.f32 %v195_v62, %v194_v57 }
  0x2f   :  { %v100_v5 = vmax.f32 %v99_v63, -100.0  ;;  %v153_v7 = vmul.f32 %v152_v59, %v150_v1  ;;  %v181_v27 = vmul.f32 %v345_v20, %v174_v13 }
  0x30   :  { %v301_v8 = vpop.eup %300  ;;  %v197_v9 = vsub.f32 0.0, %v196_v3 }
  0x31   :  { %v104_v10 = vmul.f32 %v103_v0, %v100_v5  ;;  %v130_v11 = vmul.f32 0.6931472, %v301_v8  ;;  %v239_v12 = vrot.slane %v153_v7, 4 }
  0x32   :  { %v201_v14 = vmul.f32 %v200_v4, %v197_v9 }
  0x33   :  { %v105_v15 = vadd.f32 %v104_v10, %v102_v6  ;;  %v131_v16 = vmax.f32 %v130_v11, -100.0  ;;  %v240_v19 = vadd.f32 %v239_v12, %v153_v7 }
  0x34   :  { %v303_v21 = vpop.eup %302  ;;  %v245_v22 = vrot.slane %v201_v14, 4 }
  0x35   :  { %v106_v23 = vsub.f32 0.0, %v105_v15  ;;  %v136_v24 = vmul.f32 %v135_v28, %v131_v16  ;;  %v177_v25 = vmul.f32 0.6931472, %v303_v21  ;;  %v241_v26 = vrot.slane %v240_v19, 2 }
  0x36   :  { %v246_v29 = vadd.f32 %v245_v22, %v201_v14 }
  0x37   :  { %v137_v30 = vadd.f32 %v136_v24, %v134_v18  ;;  %v178_v31 = vmax.f32 %v177_v25, -100.0  ;;  %v210_v33 = vrot.slane %v106_v23, 4  ;;  %v242_v34 = vadd.f32 %v241_v26, %v240_v19 }
  0x38   :  { %v247_v35 = vrot.slane %v246_v29, 2 }
  0x39   :  { %v138_v36 = vsub.f32 0.0, %v137_v30  ;;  %v183_v37 = vmul.f32 %v182_v32, %v178_v31  ;;  %v211_v38 = vadd.f32 %v210_v33, %v106_v23  ;;  %v243_v39 = vrot.slane %v242_v34, 1 }
  0x3a   :  { %v248_v40 = vadd.f32 %v247_v35, %v246_v29 }
  0x3b   :  { %v184_v41 = vadd.f32 %v183_v37, %v181_v27  ;;  %v212_v17 = vrot.slane %v211_v38, 2  ;;  %v216_v28 = vrot.slane %v138_v36, 4  ;;  %v244_v42 = vadd.f32 %v243_v39, %v242_v34 }
  0x3c   :  { %v249_v43 = vrot.slane %v248_v40, 1 }
  0x3d   :  { %v185_v44 = vsub.f32 0.0, %v184_v41  ;;  %v213_v45 = vadd.f32 %v212_v17, %v211_v38  ;;  %v217_v46 = vadd.f32 %v216_v28, %v138_v36 }
  0x3e   :  { %v250_v47 = vadd.f32 %v249_v43, %v248_v40 }
  0x3f   :  { %v218_v48 = vrot.slane %v217_v46, 2  ;;  %v222_v49 = vrot.slane %v185_v44, 4  ;;  %v214_v50 = vrot.slane %v213_v45, 1 }
  0x40   :  { %v253_v51 = vsel %vm231_vm4, %v250_v47, %v244_v42 }
  0x41   :  { %v219_v52 = vadd.f32 %v218_v48, %v217_v46  ;;  %v223_v20 = vadd.f32 %v222_v49, %v185_v44  ;;  %255 = vst [vmem:[%s375_s3] sm:$0x3] %v253_v51  ;;  %v215_v54 = vadd.f32 %v214_v50, %v213_v45 }
  0x43   :  { %v220_v32 = vrot.slane %v219_v52, 1  ;;  %v224_v53 = vrot.slane %v223_v20, 2 }
  0x45   :  { %v221_v55 = vadd.f32 %v220_v32, %v219_v52  ;;  %v225_v56 = vadd.f32 %v224_v53, %v223_v20 }
  0x47   :  { %v226_v57 = vrot.slane %v225_v56, 1  ;;  %v232_v58 = vsel %vm231_vm4, %v221_v55, %v215_v54 }
  0x49   :  { %v227_v59 = vadd.f32 %v226_v57, %v225_v56 }
  0x4b   :  { %v234_v60 = vsel %vm233_vm5, %v227_v59, %v232_v58 }
  0x4c   :  { %236 = vst [vmem:[%s374_s2] sm:$0x7] %v234_v60 }

</bundles_post_ra>
